<compile_context>
chip_gen: v7x
topology: tpu7x:2x2x1
jax: 0.10.0
libtpu: 0.0.40
codegen_flags: <defaults>
</compile_context>

<pallas_src>
import jax
import jax.numpy as jnp
from jax.experimental import pallas as pl
from jax.experimental.pallas import tpu as pltpu

_LANE = 128

# Flipped to False at runtime if this JAX build rejects pl.Buffered(1)
# (single-buffered resident weights); we then fall back to default buffering.
_SINGLE_BUFFER_OK = True


def _round_up(n, m):
    return ((n + m - 1) // m) * m


def _vmem_capacity_bytes():
    # v7x: 64 MiB per TensorCore (smallest current chip); v5e/v6e: 128 MiB.
    try:
        return int(pltpu.get_tpu_info().vmem_capacity_bytes)
    except Exception:
        return 64 * 1024 * 1024


def _pick_hidden_tile(h_pad, max_th):
    """Largest multiple-of-128 tile that divides h_pad and is <= max_th."""
    groups = h_pad // _LANE
    best = _LANE
    for d in range(1, groups + 1):
        if groups % d == 0 and d * _LANE <= max_th:
            best = d * _LANE
    return best


def _mlp_kernel(x_ref, w1_ref, b1_ref, w2_ref, b2_ref, o_ref, acc_ref):
    """One (batch-tile, hidden-tile) step of relu(x@W1+b1)@W2 + b2."""
    hj = pl.program_id(1)

    @pl.when(hj == 0)
    def _():
        acc_ref[...] = jnp.zeros_like(acc_ref)

    # fc1 tile: [TB, I] @ [I, TH] -> f32 accumulate, f32 bias add, ReLU.
    h = jnp.dot(x_ref[...], w1_ref[...], preferred_element_type=jnp.float32)
    h = jnp.maximum(h + b1_ref[...], 0.0)
    # fc2 partial: [TB, TH] @ [TH, O_pad], accumulated in f32 across H tiles.
    acc_ref[...] += jnp.dot(h.astype(w2_ref.dtype), w2_ref[...],
                            preferred_element_type=jnp.float32)

    @pl.when(hj == pl.num_programs(1) - 1)
    def _():
        o_ref[...] = (acc_ref[...] + b2_ref[...]).astype(o_ref.dtype)


def prepare_params(w1_t, b1, w2_t, b2, *, compute_dtype=None):
    """One-time parameter prep (pad H/O to 128 lanes, cast), hoisted out of the
    forward path so each forward pays zero weight-sized HBM traffic.

    w1_t: [I, H] (pre-transposed), b1: [H]/[1,H], w2_t: [H, O], b2: [O]/[1,O].
    """
    I, H = w1_t.shape
    O = w2_t.shape[1]
    cdt = jnp.dtype(compute_dtype) if compute_dtype is not None else jnp.dtype(w1_t.dtype)
    H_pad = _round_up(H, _LANE)
    O_pad = _round_up(O, _LANE)
    w1p = jnp.pad(w1_t, ((0, 0), (0, H_pad - H))).astype(cdt)
    w2p = jnp.pad(w2_t, ((0, H_pad - H), (0, O_pad - O))).astype(cdt)
    b1p = jnp.pad(jnp.reshape(b1, (1, H)).astype(jnp.float32),
                  ((0, 0), (0, H_pad - H)))
    b2p = jnp.pad(jnp.reshape(b2, (1, O)).astype(jnp.float32),
                  ((0, 0), (0, O_pad - O)))
    return {"w1": w1p, "b1": b1p, "w2": w2p, "b2": b2p,
            "dims": (I, H, O), "compute_dtype": cdt}


def feedforward_classifier(x, params, *, block_b=512, block_h=None,
                           out_dtype=None):
    """x: [B, I] -> [B, O].  `params` comes from prepare_params()."""
    global _SINGLE_BUFFER_OK

    I, H, O = params["dims"]
    cdt = params["compute_dtype"]
    w1p, b1p, w2p, b2p = params["w1"], params["b1"], params["w2"], params["b2"]
    H_pad, O_pad = w1p.shape[1], w2p.shape[1]

    B, I_x = x.shape
    assert I_x == I, f"x feature dim {I_x} != param input dim {I}"
    out_dtype = jnp.dtype(out_dtype) if out_dtype is not None else x.dtype

    sublane = 16 if cdt == jnp.dtype(jnp.bfloat16) else 8
    in_item = cdt.itemsize
    out_item = jnp.dtype(out_dtype).itemsize

    # ---------------- tile selection under an explicit VMEM budget ----------
    cap = _vmem_capacity_bytes()
    budget = int(cap * 0.7)

    desired = max(sublane, _round_up(block_b, sublane))
    # Whole batch in one tile when it fits (block == full dim is always legal),
    # otherwise sublane-aligned tiles with a masked partial trailing block.
    TB = B if B <= desired else desired
    # Keep >= 2 steps along the "parallel" batch axis when B allows it so both
    # v7x TensorCores get work (one extra ~0.35us step is noise on v5e/v6e).
    if pl.cdiv(B, TB) < 2 and B >= 2 * sublane:
        TB = _round_up(pl.cdiv(B, 2), sublane)

    max_th = H_pad if block_h is None else max(_LANE, int(block_h))
    TH = _pick_hidden_tile(H_pad, max_th)

    def vmem_need(tb, th):
        wt_bufs = 1 if th == H_pad else 2          # resident weights single-buffered
        w = wt_bufs * (I * th + th * O_pad) * in_item
        bias = wt_bufs * th * 4 + O_pad * 4
        xb = 2 * tb * I * in_item                  # double-buffered x
        ob = 2 * tb * O_pad * out_item             # double-buffered out
        acc = tb * O_pad * 4                       # f32 accumulator scratch
        hbuf = tb * th * 4                         # f32 fc1 intermediate
        return w + bias + xb + ob + acc + hbuf

    # Shrink the batch tile first, then the hidden tile, until we fit.
    while TB > sublane and vmem_need(TB, TH) > budget:
        TB = max(sublane, _round_up(TB // 2, sublane))
    while TH > _LANE and vmem_need(TB, TH) > budget:
        TH = _pick_hidden_tile(H_pad, TH // 2)
    # TODO(synk): for enormous input widths where even (TB=sublane, TH=128)
    # exceeds the budget, an extra reduction tiling over I would be needed.

    num_b = pl.cdiv(B, TB)
    num_h = H_pad // TH
    resident = (TH == H_pad)

    need = vmem_need(TB, TH)
    vmem_limit = int(min(0.9 * cap, max(1.5 * need + (2 << 20), 32 << 20)))

    flops = 2 * B * (I * H_pad + H_pad * O_pad)
    bytes_accessed = (B * I * in_item
                      + (I * H_pad + H_pad * O_pad) * in_item
                      + (H_pad + O_pad) * 4
                      + B * O_pad * out_item)
    cost = pl.CostEstimate(flops=flops, transcendentals=0,
                           bytes_accessed=bytes_accessed)

    def _build(single_buffer):
        def wspec(shape, imap, const):
            if const and single_buffer:
                return pl.BlockSpec(shape, imap, pipeline_mode=pl.Buffered(1))
            return pl.BlockSpec(shape, imap)

        in_specs = [
            pl.BlockSpec((TB, I), lambda i, j: (i, 0)),            # x per batch tile
            wspec((I, TH), lambda i, j: (0, j), resident),          # W1 tile
            wspec((1, TH), lambda i, j: (0, j), resident),          # b1 tile
            wspec((TH, O_pad), lambda i, j: (j, 0), resident),      # W2 tile
            wspec((1, O_pad), lambda i, j: (0, 0), True),           # b2 (constant)
        ]
        out_specs = pl.BlockSpec((TB, O_pad), lambda i, j: (i, 0))  # lane-dense store
        return pl.pallas_call(
            _mlp_kernel,
            out_shape=jax.ShapeDtypeStruct((B, O_pad), out_dtype),
            grid_spec=pltpu.PrefetchScalarGridSpec(
                num_scalar_prefetch=0,
                grid=(num_b, num_h),                # reduction (H) axis last
                in_specs=in_specs,
                out_specs=out_specs,
                scratch_shapes=[pltpu.VMEM((TB, O_pad), jnp.float32)],
            ),
            compiler_params=pltpu.CompilerParams(
                dimension_semantics=("parallel", "arbitrary"),
                vmem_limit_bytes=vmem_limit,
            ),
            cost_estimate=cost,
        )

    xq = x if x.dtype == cdt else x.astype(cdt)
    args = (xq, w1p, b1p, w2p, b2p)

    if _SINGLE_BUFFER_OK:
        try:
            out = _build(True)(*args)
        except Exception:
            _SINGLE_BUFFER_OK = False
            out = _build(False)(*args)
    else:
        out = _build(False)(*args)

    return out[:, :O] if O != O_pad else out


def _init_params(key, input_size, hidden_size, output_size):
    """Deterministic init mimicking nn.Linear's U(-1/sqrt(fan_in), +1/sqrt(fan_in)).
    Weights stored pre-transposed as [in, out]."""
    k1, k2, k3, k4 = jax.random.split(key, 4)
    bound1 = 1.0 / jnp.sqrt(input_size)
    bound2 = 1.0 / jnp.sqrt(hidden_size)
    w1_t = jax.random.uniform(k1, (input_size, hidden_size), jnp.float32, -bound1, bound1)
    b1 = jax.random.uniform(k2, (1, hidden_size), jnp.float32, -bound1, bound1)
    w2_t = jax.random.uniform(k3, (hidden_size, output_size), jnp.float32, -bound2, bound2)
    b2 = jax.random.uniform(k4, (1, output_size), jnp.float32, -bound2, bound2)
    return w1_t, b1, w2_t, b2


if __name__ == "__main__":
    key = jax.random.PRNGKey(0)
    kx, kp, kx2, kp2 = jax.random.split(key, 4)

    # --- small shapes consistent with the module: x is [batch, input_size] ---
    batch, input_size, hidden_size, output_size = 8, 64, 32, 4
    x = jax.random.normal(kx, (batch, input_size), jnp.float32)
    w1_t, b1, w2_t, b2 = _init_params(kp, input_size, hidden_size, output_size)
    ref = jnp.maximum(x @ w1_t + b1, 0.0) @ w2_t + b2

    # f32 path; params padded/cast ONCE outside the forward path.
    params = prepare_params(w1_t, b1, w2_t, b2)
    out = jax.block_until_ready(feedforward_classifier(x, params))
    assert out.shape == (batch, output_size)
    assert jnp.allclose(out, ref, atol=1e-5, rtol=1e-5)

    # bf16-operand path (f32 MXU accumulation) -- best on v6e/v7x; on v5e keep
    # f32 operands unless the layer is HBM-bound.
    params_bf16 = prepare_params(w1_t, b1, w2_t, b2, compute_dtype=jnp.bfloat16)
    out_bf16 = jax.block_until_ready(feedforward_classifier(x, params_bf16))
    assert out_bf16.shape == (batch, output_size)
    assert jnp.allclose(out_bf16, ref, atol=5e-2, rtol=5e-2)

    # Larger, non-aligned shapes: exercises the un-padded batch grid with a
    # masked partial trailing block, a >=2-step parallel batch axis, and the
    # H-tiled reduction path (block_h=128 -> 4 hidden tiles + f32 accumulator).
    batch2, in2, hid2, out2 = 300, 192, 512, 10
    x2 = jax.random.normal(kx2, (batch2, in2), jnp.float32)
    p2 = _init_params(kp2, in2, hid2, out2)
    ref2 = jnp.maximum(x2 @ p2[0] + p2[1], 0.0) @ p2[2] + p2[3]
    params2 = prepare_params(*p2)
    y2 = jax.block_until_ready(
        feedforward_classifier(x2, params2, block_b=128, block_h=128))
    assert y2.shape == (batch2, out2)
    assert jnp.allclose(y2, ref2, atol=1e-4, rtol=1e-4)

    print("KERNEL_OK")
</pallas_src>

<mosaic_0001>
module attributes {stable_mosaic.version = 11 : i64} {
  func.func @_mlp_kernel(%arg0: i32, %arg1: i32, %arg2: memref<8x64xf32, #tpu.memory_space<vmem>>, %arg3: memref<64x128xf32, #tpu.memory_space<vmem>>, %arg4: memref<1x128xf32, #tpu.memory_space<vmem>>, %arg5: memref<128x128xf32, #tpu.memory_space<vmem>>, %arg6: memref<1x128xf32, #tpu.memory_space<vmem>>, %arg7: memref<8x128xf32, #tpu.memory_space<vmem>>, %arg8: memref<8x128xf32, #tpu.memory_space<vmem>>) attributes {dimension_semantics = [#tpu.dimension_semantics<parallel>, #tpu.dimension_semantics<arbitrary>], iteration_bounds = array<i64: 1, 1>, scalar_prefetch = 0 : i64, scratch_operands = 1 : i64, tpu.core_type = #tpu.core_type<tc>, window_params = [{transform_indices = @transform_0, window_bounds = array<i64: 8, 64>}, {pipeline_mode = #tpu.pipeline_mode<synchronous>, transform_indices = @transform_1, window_bounds = array<i64: 64, 128>}, {pipeline_mode = #tpu.pipeline_mode<synchronous>, transform_indices = @transform_2, window_bounds = array<i64: 1, 128>}, {pipeline_mode = #tpu.pipeline_mode<synchronous>, transform_indices = @transform_3, window_bounds = array<i64: 128, 128>}, {pipeline_mode = #tpu.pipeline_mode<synchronous>, transform_indices = @transform_4, window_bounds = array<i64: 1, 128>}, {transform_indices = @transform_5, window_bounds = array<i64: 8, 128>}]} {
    %c0_i32 = arith.constant 0 : i32
    %0 = arith.cmpi eq, %arg1, %c0_i32 : i32
    %1 = arith.extui %0 : i1 to i32
    %c0_i32_0 = arith.constant 0 : i32
    %2 = arith.cmpi ne, %1, %c0_i32_0 : i32
    scf.if %2 {
      %cst_16 = arith.constant 0.000000e+00 : f32
      %19 = vector.broadcast %cst_16 : f32 to vector<8x128xf32>
      %c0_17 = arith.constant 0 : index
      %c0_18 = arith.constant 0 : index
      %20 = vector.load %arg8[%c0_17, %c0_18] : memref<8x128xf32, #tpu.memory_space<vmem>>, vector<8x128xf32>
      tpu.vector_store %arg8[%c0_17, %c0_18], %19 {strides = array<i32>} : memref<8x128xf32, #tpu.memory_space<vmem>>, vector<8x128xf32>,
    } else {
    }
    %c0 = arith.constant 0 : index
    %c0_1 = arith.constant 0 : index
    %3 = vector.load %arg2[%c0, %c0_1] : memref<8x64xf32, #tpu.memory_space<vmem>>, vector<8x64xf32>
    %c0_2 = arith.constant 0 : index
    %c0_3 = arith.constant 0 : index
    %4 = vector.load %arg3[%c0_2, %c0_3] : memref<64x128xf32, #tpu.memory_space<vmem>>, vector<64x128xf32>
    %cst = arith.constant dense<0.000000e+00> : vector<8x128xf32>
    %5 = tpu.matmul %3, %4, %cst {dimension_numbers = #tpu.dot_dimension_numbers<[1], [0], [0], [1], [0, 0, 1, 1], [], []>} : vector<8x64xf32>, vector<64x128xf32>, vector<8x128xf32> -> vector<8x128xf32>
    %c0_4 = arith.constant 0 : index
    %c0_5 = arith.constant 0 : index
    %6 = vector.load %arg4[%c0_4, %c0_5] : memref<1x128xf32, #tpu.memory_space<vmem>>, vector<1x128xf32>
    %7 = vector.broadcast %6 : vector<1x128xf32> to vector<8x128xf32>
    %8 = arith.addf %5, %7 : vector<8x128xf32>
    %cst_6 = arith.constant 0.000000e+00 : f32
    %9 = vector.broadcast %cst_6 : f32 to vector<8x128xf32>
    %10 = arith.maximumf %8, %9 : vector<8x128xf32>
    %c0_7 = arith.constant 0 : index
    %c0_8 = arith.constant 0 : index
    %11 = vector.load %arg8[%c0_7, %c0_8] : memref<8x128xf32, #tpu.memory_space<vmem>>, vector<8x128xf32>
    %c0_9 = arith.constant 0 : index
    %c0_10 = arith.constant 0 : index
    %12 = vector.load %arg5[%c0_9, %c0_10] : memref<128x128xf32, #tpu.memory_space<vmem>>, vector<128x128xf32>
    %cst_11 = arith.constant dense<0.000000e+00> : vector<8x128xf32>
    %13 = tpu.matmul %10, %12, %cst_11 {dimension_numbers = #tpu.dot_dimension_numbers<[1], [0], [0], [1], [0, 0, 1, 1], [], []>} : vector<8x128xf32>, vector<128x128xf32>, vector<8x128xf32> -> vector<8x128xf32>
    %14 = arith.addf %11, %13 : vector<8x128xf32>
    %c0_12 = arith.constant 0 : index
    %c0_13 = arith.constant 0 : index
    %15 = vector.load %arg8[%c0_12, %c0_13] : memref<8x128xf32, #tpu.memory_space<vmem>>, vector<8x128xf32>
    tpu.vector_store %arg8[%c0_12, %c0_13], %14 {strides = array<i32>} : memref<8x128xf32, #tpu.memory_space<vmem>>, vector<8x128xf32>,
    %c0_i32_14 = arith.constant 0 : i32
    %16 = arith.cmpi eq, %arg1, %c0_i32_14 : i32
    %17 = arith.extui %16 : i1 to i32
    %c0_i32_15 = arith.constant 0 : i32
    %18 = arith.cmpi ne, %17, %c0_i32_15 : i32
    scf.if %18 {
      %c0_16 = arith.constant 0 : index
      %c0_17 = arith.constant 0 : index
      %19 = vector.load %arg8[%c0_16, %c0_17] : memref<8x128xf32, #tpu.memory_space<vmem>>, vector<8x128xf32>
      %c0_18 = arith.constant 0 : index
      %c0_19 = arith.constant 0 : index
      %20 = vector.load %arg6[%c0_18, %c0_19] : memref<1x128xf32, #tpu.memory_space<vmem>>, vector<1x128xf32>
      %21 = vector.broadcast %20 : vector<1x128xf32> to vector<8x128xf32>
      %22 = arith.addf %19, %21 : vector<8x128xf32>
      %c0_20 = arith.constant 0 : index
      %c0_21 = arith.constant 0 : index
      %23 = vector.load %arg7[%c0_20, %c0_21] : memref<8x128xf32, #tpu.memory_space<vmem>>, vector<8x128xf32>
      tpu.vector_store %arg7[%c0_20, %c0_21], %22 {strides = array<i32>} : memref<8x128xf32, #tpu.memory_space<vmem>>, vector<8x128xf32>,
    } else {
    }
    return
  }
  func.func @transform_0(%arg0: i32, %arg1: i32) -> (i32, i32) {
    %c0_i32 = arith.constant 0 : i32
    %c0_i32_0 = arith.constant 0 : i32
    return %arg0, %c0_i32 : i32, i32
  }
  func.func @transform_1(%arg0: i32, %arg1: i32) -> (i32, i32) {
    %c0_i32 = arith.constant 0 : i32
    %c0_i32_0 = arith.constant 0 : i32
    return %c0_i32, %arg1 : i32, i32
  }
  func.func @transform_2(%arg0: i32, %arg1: i32) -> (i32, i32) {
    %c0_i32 = arith.constant 0 : i32
    %c0_i32_0 = arith.constant 0 : i32
    return %c0_i32, %arg1 : i32, i32
  }
  func.func @transform_3(%arg0: i32, %arg1: i32) -> (i32, i32) {
    %c0_i32 = arith.constant 0 : i32
    %c0_i32_0 = arith.constant 0 : i32
    return %arg1, %c0_i32 : i32, i32
  }
  func.func @transform_4(%arg0: i32, %arg1: i32) -> (i32, i32) {
    %c0_i32 = arith.constant 0 : i32
    %c0_i32_0 = arith.constant 0 : i32
    %c0_i32_1 = arith.constant 0 : i32
    return %c0_i32, %c0_i32_0 : i32, i32
  }
  func.func @transform_5(%arg0: i32, %arg1: i32) -> (i32, i32) {
    %c0_i32 = arith.constant 0 : i32
    %c0_i32_0 = arith.constant 0 : i32
    return %arg0, %c0_i32 : i32, i32
  }
}

module attributes {stable_mosaic.version = 11 : i64} {
  func.func @_mlp_kernel(%arg0: i32, %arg1: i32, %arg2: memref<8x64xf32, #tpu.memory_space<vmem>>, %arg3: memref<64x128xf32, #tpu.memory_space<vmem>>, %arg4: memref<1x128xf32, #tpu.memory_space<vmem>>, %arg5: memref<128x128xf32, #tpu.memory_space<vmem>>, %arg6: memref<1x128xf32, #tpu.memory_space<vmem>>, %arg7: memref<8x128xf32, #tpu.memory_space<vmem>>, %arg8: memref<8x128xf32, #tpu.memory_space<vmem>>) attributes {dimension_semantics = [#tpu.dimension_semantics<parallel>, #tpu.dimension_semantics<arbitrary>], iteration_bounds = array<i64: 1, 1>, scalar_prefetch = 0 : i64, scratch_operands = 1 : i64, tpu.core_type = #tpu.core_type<tc>, window_params = [{transform_indices = @transform_0, window_bounds = array<i64: 8, 64>}, {transform_indices = @transform_1, window_bounds = array<i64: 64, 128>}, {transform_indices = @transform_2, window_bounds = array<i64: 1, 128>}, {transform_indices = @transform_3, window_bounds = array<i64: 128, 128>}, {pipeline_mode = #tpu.pipeline_mode<synchronous>, transform_indices = @transform_4, window_bounds = array<i64: 1, 128>}, {transform_indices = @transform_5, window_bounds = array<i64: 8, 128>}]} {
    %c0_i32 = arith.constant 0 : i32
    %0 = arith.cmpi eq, %arg1, %c0_i32 : i32
    %1 = arith.extui %0 : i1 to i32
    %c0_i32_0 = arith.constant 0 : i32
    %2 = arith.cmpi ne, %1, %c0_i32_0 : i32
    scf.if %2 {
      %cst_16 = arith.constant 0.000000e+00 : f32
      %19 = vector.broadcast %cst_16 : f32 to vector<8x128xf32>
      %c0_17 = arith.constant 0 : index
      %c0_18 = arith.constant 0 : index
      %20 = vector.load %arg8[%c0_17, %c0_18] : memref<8x128xf32, #tpu.memory_space<vmem>>, vector<8x128xf32>
      tpu.vector_store %arg8[%c0_17, %c0_18], %19 {strides = array<i32>} : memref<8x128xf32, #tpu.memory_space<vmem>>, vector<8x128xf32>,
    } else {
    }
    %c0 = arith.constant 0 : index
    %c0_1 = arith.constant 0 : index
    %3 = vector.load %arg2[%c0, %c0_1] : memref<8x64xf32, #tpu.memory_space<vmem>>, vector<8x64xf32>
    %c0_2 = arith.constant 0 : index
    %c0_3 = arith.constant 0 : index
    %4 = vector.load %arg3[%c0_2, %c0_3] : memref<64x128xf32, #tpu.memory_space<vmem>>, vector<64x128xf32>
    %cst = arith.constant dense<0.000000e+00> : vector<8x128xf32>
    %5 = tpu.matmul %3, %4, %cst {dimension_numbers = #tpu.dot_dimension_numbers<[1], [0], [0], [1], [0, 0, 1, 1], [], []>} : vector<8x64xf32>, vector<64x128xf32>, vector<8x128xf32> -> vector<8x128xf32>
    %c0_4 = arith.constant 0 : index
    %c0_5 = arith.constant 0 : index
    %6 = vector.load %arg4[%c0_4, %c0_5] : memref<1x128xf32, #tpu.memory_space<vmem>>, vector<1x128xf32>
    %7 = vector.broadcast %6 : vector<1x128xf32> to vector<8x128xf32>
    %8 = arith.addf %5, %7 : vector<8x128xf32>
    %cst_6 = arith.constant 0.000000e+00 : f32
    %9 = vector.broadcast %cst_6 : f32 to vector<8x128xf32>
    %10 = arith.maximumf %8, %9 : vector<8x128xf32>
    %c0_7 = arith.constant 0 : index
    %c0_8 = arith.constant 0 : index
    %11 = vector.load %arg8[%c0_7, %c0_8] : memref<8x128xf32, #tpu.memory_space<vmem>>, vector<8x128xf32>
    %c0_9 = arith.constant 0 : index
    %c0_10 = arith.constant 0 : index
    %12 = vector.load %arg5[%c0_9, %c0_10] : memref<128x128xf32, #tpu.memory_space<vmem>>, vector<128x128xf32>
    %cst_11 = arith.constant dense<0.000000e+00> : vector<8x128xf32>
    %13 = tpu.matmul %10, %12, %cst_11 {dimension_numbers = #tpu.dot_dimension_numbers<[1], [0], [0], [1], [0, 0, 1, 1], [], []>} : vector<8x128xf32>, vector<128x128xf32>, vector<8x128xf32> -> vector<8x128xf32>
    %14 = arith.addf %11, %13 : vector<8x128xf32>
    %c0_12 = arith.constant 0 : index
    %c0_13 = arith.constant 0 : index
    %15 = vector.load %arg8[%c0_12, %c0_13] : memref<8x128xf32, #tpu.memory_space<vmem>>, vector<8x128xf32>
    tpu.vector_store %arg8[%c0_12, %c0_13], %14 {strides = array<i32>} : memref<8x128xf32, #tpu.memory_space<vmem>>, vector<8x128xf32>,
    %c0_i32_14 = arith.constant 0 : i32
    %16 = arith.cmpi eq, %arg1, %c0_i32_14 : i32
    %17 = arith.extui %16 : i1 to i32
    %c0_i32_15 = arith.constant 0 : i32
    %18 = arith.cmpi ne, %17, %c0_i32_15 : i32
    scf.if %18 {
      %c0_16 = arith.constant 0 : index
      %c0_17 = arith.constant 0 : index
      %19 = vector.load %arg8[%c0_16, %c0_17] : memref<8x128xf32, #tpu.memory_space<vmem>>, vector<8x128xf32>
      %c0_18 = arith.constant 0 : index
      %c0_19 = arith.constant 0 : index
      %20 = vector.load %arg6[%c0_18, %c0_19] : memref<1x128xf32, #tpu.memory_space<vmem>>, vector<1x128xf32>
      %21 = vector.broadcast %20 : vector<1x128xf32> to vector<8x128xf32>
      %22 = arith.addf %19, %21 : vector<8x128xf32>
      %c0_20 = arith.constant 0 : index
      %c0_21 = arith.constant 0 : index
      %23 = vector.load %arg7[%c0_20, %c0_21] : memref<8x128xf32, #tpu.memory_space<vmem>>, vector<8x128xf32>
      tpu.vector_store %arg7[%c0_20, %c0_21], %22 {strides = array<i32>} : memref<8x128xf32, #tpu.memory_space<vmem>>, vector<8x128xf32>,
    } else {
    }
    return
  }
  func.func @transform_0(%arg0: i32, %arg1: i32) -> (i32, i32) {
    %c0_i32 = arith.constant 0 : i32
    %c0_i32_0 = arith.constant 0 : i32
    return %arg0, %c0_i32 : i32, i32
  }
  func.func @transform_1(%arg0: i32, %arg1: i32) -> (i32, i32) {
    %c0_i32 = arith.constant 0 : i32
    %c0_i32_0 = arith.constant 0 : i32
    return %c0_i32, %arg1 : i32, i32
  }
  func.func @transform_2(%arg0: i32, %arg1: i32) -> (i32, i32) {
    %c0_i32 = arith.constant 0 : i32
    %c0_i32_0 = arith.constant 0 : i32
    return %c0_i32, %arg1 : i32, i32
  }
  func.func @transform_3(%arg0: i32, %arg1: i32) -> (i32, i32) {
    %c0_i32 = arith.constant 0 : i32
    %c0_i32_0 = arith.constant 0 : i32
    return %arg1, %c0_i32 : i32, i32
  }
  func.func @transform_4(%arg0: i32, %arg1: i32) -> (i32, i32) {
    %c0_i32 = arith.constant 0 : i32
    %c0_i32_0 = arith.constant 0 : i32
    %c0_i32_1 = arith.constant 0 : i32
    return %c0_i32, %c0_i32_0 : i32, i32
  }
  func.func @transform_5(%arg0: i32, %arg1: i32) -> (i32, i32) {
    %c0_i32 = arith.constant 0 : i32
    %c0_i32_0 = arith.constant 0 : i32
    return %arg0, %c0_i32 : i32, i32
  }
}

</mosaic_0001>

<bundles_post_ra>
// kernel: tpu_custom_call.1
= control target key start
LH: loop header
LB: loop body
LE: loop exit
PB: predicated region body
PF: predicated region fallthrough
CT: control target
= control target key end

     0   :  { %10 = vsyncpa [#allocation4], 0  ;;  %s595_s0 = inlined_call_operand.hbm [shape: f32[8,64], index: 0, kind: input, shape index: {}]   ;;  %s596_s1 = inlined_call_operand.hbm [shape: f32[64,128], index: 1, kind: input, shape index: {}]   ;;  %s597_s2 = inlined_call_operand.vmem [shape: f32[1,128], index: 2, kind: input, shape index: {}]   ;;  %s598_s3 = inlined_call_operand.hbm [shape: f32[128,128], index: 3, kind: input, shape index: {}]   ;;  %s599_s4 = inlined_call_operand.vmem [shape: f32[1,128], index: 4, kind: input, shape index: {}]   ;;  %s600_s5 = inlined_call_operand.hbm [shape: f32[8,128], index: 5, kind: output, shape index: {}]  }
   0x1   :  { %11 = vsyncpa [#allocation7], 0 }
   0x2   :  { %12 = vsyncpa [#allocation5], 0  ;;  %s496_s18 = smov [#allocation6]   ;;  %s402_s22 = scalar_lea.hbm %s596_s1, 1024 }
   0x3   :  { %s28_s19 = sshll.u32 %s496_s18, 4  ;;  %p403_p0 = scmp.ne.s32.totalorder %s596_s1, %s402_s22  ;;  %s29_s19 = int_to_ptr.vmem [resolvable:$true] %s28_s19 }
   0x4   :  { %p406_p1 = scmp.lt.u32.totalorder %s402_s22, %s596_s1 }
   0x6   :  { %p408_p2 = pnand %p406_p1, %p403_p0 }
   0x8   :  { %411 = shalt.err (!%p408_p2)
}
   0x9   :  { %s412_s27 = scalar_lea.vmem %s29_s19, 1024  ;;  %p417_p4 = scmp.lt.s32.totalorder %s29_s19, %s29_s19 }
   0xa   :  { %p413_p3 = scmp.ne.s32.totalorder %s29_s19, %s412_s27  ;;  %p418_p5 = scmp.lt.s32.totalorder %s412_s27, %s412_s27 }
   0xc   :  { %p419_p6 = por %p418_p5, %p417_p4 }
   0xe   :  { %p420_p7 = pnand %p419_p6, %p413_p3 }
  0x10   :  { %423 = shalt.err (!%p420_p7)
}
  0x11   :  { %s497_s28 = smov 128   ;;  %s498_s29 = smov 8  }
  0x12   :  { %34 = dma.hbm_to_vmem [thread:$0]  %s596_s1, 1024, %s29_s19, [#allocation7], %s497_s28, %s497_s28, %s498_s29  }
  0x13   :  { %s499_s7 = smov [#allocation3]   ;;  %s500_s9 = smov [#allocation8]  }
  0x14   :  { %s19_s8 = sshll.u32 %s499_s7, 4  ;;  %s42_s10 = sshll.u32 %s500_s9, 4  ;;  %s20_s8 = int_to_ptr.vmem [resolvable:$true] %s19_s8  ;;  %s43_s10 = int_to_ptr.vmem [resolvable:$true] %s42_s10 }
  0x15   :  { %s424_s13 = scalar_lea.hbm %s595_s0, 128 }
  0x16   :  { %p425_p8 = scmp.ne.s32.totalorder %s595_s0, %s424_s13  ;;  %p428_p9 = scmp.lt.u32.totalorder %s424_s13, %s595_s0 }
  0x18   :  { %p430_p10 = pnand %p428_p9, %p425_p8 }
  0x1a   :  { %433 = shalt.err (!%p430_p10)
}
  0x1b   :  { %s434_s1 = scalar_lea.vmem %s20_s8, 128  ;;  %p439_p12 = scmp.lt.s32.totalorder %s20_s8, %s20_s8 }
  0x1c   :  { %p435_p11 = scmp.ne.s32.totalorder %s20_s8, %s434_s1  ;;  %p440_p13 = scmp.lt.s32.totalorder %s434_s1, %s434_s1 }
  0x1e   :  { %p441_p0 = por %p440_p13, %p439_p12 }
  0x20   :  { %p442_p1 = pnand %p441_p0, %p435_p11 }
  0x22   :  { %445 = shalt.err (!%p442_p1)
}
  0x23   :  { %22 = dma.hbm_to_vmem [thread:$0]  %s595_s0, 128, %s20_s8, [#allocation4]  }
  0x24   :  { %s446_s22 = scalar_lea.hbm %s598_s3, 2048 }
  0x25   :  { %p447_p2 = scmp.ne.s32.totalorder %s598_s3, %s446_s22  ;;  %p450_p3 = scmp.lt.u32.totalorder %s446_s22, %s598_s3 }
  0x27   :  { %p452_p4 = pnand %p450_p3, %p447_p2 }
  0x29   :  { %455 = shalt.err (!%p452_p4)
}
  0x2a   :  { %s456_s27 = scalar_lea.vmem %s43_s10, 2048  ;;  %p461_p6 = scmp.lt.s32.totalorder %s43_s10, %s43_s10 }
  0x2b   :  { %p457_p5 = scmp.ne.s32.totalorder %s43_s10, %s456_s27  ;;  %p462_p7 = scmp.lt.s32.totalorder %s456_s27, %s456_s27 }
  0x2d   :  { %p463_p8 = por %p462_p7, %p461_p6 }
  0x2f   :  { %p464_p9 = pnand %p463_p8, %p457_p5 }
  0x31   :  { %467 = shalt.err (!%p464_p9)
}
  0x32   :  { %48 = dma.hbm_to_vmem [thread:$0]  %s598_s3, 2048, %s43_s10, [#allocation7], %s497_s28, %s497_s28, %s498_s29  }
  0x33   :  { %490 = dma.done.wait [#allocation4], 128  }
  0x34   :  { %491 = vsyncadd [#allocation4], 4294967168 }
  0x35   :  { %492 = dma.done.wait [#allocation7], 3072  }
  0x36   :  { %493 = vsyncadd [#allocation7], 4294964224  ;;  %v501_v0 = vmov 0.0|0.0   ;;  %vm502_vm0 = vmmov 0   ;;  %v503_v1 = vmov 0.0   ;;  %v66_v2 = vld [vmem:[#allocation6] sm:$0xff] }
  0x37   :  { %357 = vmatprep.subr.bf16.mxu0 %v501_v0  ;;  %319 = vmatprep.mubr.msk.f32.mxu0 %vm502_vm0, %v503_v1  ;;  %v67_v3 = vld [vmem:[#allocation6 + $0x8] sm:$0xff]  ;;  %v68_v4 = vld [vmem:[#allocation6 + $0x10] sm:$0xff]  ;;  %v69_v6 = vld [vmem:[#allocation6 + $0x18] sm:$0xff]  ;;  %vm81_vm1 = vcmask 523264   ;;  %s504_s7 = smov [#allocation9]  }
  0x38   :  { %369 = vmatprep.subr.bf16.mxu1 %v501_v0  ;;  %354 = vmatprep.mubr.msk.f32.mxu1 %vm502_vm0, %v503_v1  ;;  %v358_v5 = vpack.c.bf16 %v67_v3, %v66_v2  ;;  %v361_v7 = vpack.c.bf16 %v69_v6, %v68_v4  ;;  %v157_v8 = vld [vmem:[#allocation8] sm:$0xff]  ;;  %v158_v9 = vld [vmem:[#allocation8 + $0x8] sm:$0xff]  ;;  %v159_v10 = vld [vmem:[#allocation8 + $0x10] sm:$0xff]  ;;  %s264_s8 = sshll.u32 %s504_s7, 4  ;;  %s265_s8 = int_to_ptr.vmem [resolvable:$true] %s264_s8 }
  0x39   :  { %v70_v11 = vld [vmem:[#allocation6 + $0x20] sm:$0xff]  ;;  %v71_v12 = vld [vmem:[#allocation6 + $0x28] sm:$0xff]  ;;  %v370_v13 = vpack.c.bf16 %v158_v9, %v157_v8  ;;  %v160_v14 = vld [vmem:[#allocation8 + $0x18] sm:$0xff]  ;;  %s468_s9 = scalar_lea.vmem %s265_s8, 128  ;;  %p473_p11 = scmp.lt.s32.totalorder %s265_s8, %s265_s8 }
  0x3a   :  { %359 = vmatpush3.bf16.msra.mxu0 %v358_v5  ;;  %v373_v15 = vpack.c.bf16 %v160_v14, %v159_v10  ;;  %v364_v16 = vpack.c.bf16 %v71_v12, %v70_v11  ;;  %v161_v17 = vld [vmem:[#allocation8 + $0x20] sm:$0xff]  ;;  %v162_v18 = vld [vmem:[#allocation8 + $0x28] sm:$0xff]  ;;  %v72_v19 = vld [vmem:[#allocation6 + $0x30] sm:$0xff]  ;;  %p469_p10 = scmp.ne.s32.totalorder %s265_s8, %s468_s9  ;;  %p474_p12 = scmp.lt.s32.totalorder %s468_s9, %s468_s9 }
  0x3b   :  { %360 = vmatprep.subr.bf16.mxu0 %v501_v0  ;;  %371 = vmatpush3.bf16.msra.mxu1 %v370_v13  ;;  %v73_v20 = vld [vmem:[#allocation6 + $0x38] sm:$0xff]  ;;  %v376_v21 = vpack.c.bf16 %v162_v18, %v161_v17  ;;  %v163_v23 = vld [vmem:[#allocation8 + $0x30] sm:$0xff]  ;;  %v165_v27 = vld [vmem:[#allocation8 + $0x40] sm:$0xff] }
  0x3c   :  { %372 = vmatprep.subr.bf16.mxu1 %v501_v0  ;;  %v367_v22 = vpack.c.bf16 %v73_v20, %v72_v19  ;;  %v164_v24 = vld [vmem:[#allocation8 + $0x38] sm:$0xff]  ;;  %v166_v28 = vld [vmem:[#allocation8 + $0x48] sm:$0xff]  ;;  %v167_v30 = vld [vmem:[#allocation8 + $0x50] sm:$0xff]  ;;  %p475_p13 = por %p474_p12, %p473_p11 }
  0x3d   :  { %v379_v25 = vpack.c.bf16 %v164_v24, %v163_v23  ;;  %v65_v26 = vld [vmem:[#allocation3] sm:$0xff]  ;;  %v382_v29 = vpack.c.bf16 %v166_v28, %v165_v27  ;;  %v169_v33 = vld [vmem:[#allocation8 + $0x60] sm:$0xff]  ;;  %v170_v34 = vld [vmem:[#allocation8 + $0x68] sm:$0xff] }
  0x3e   :  { %362 = vmatpush3.bf16.msra.mxu0 %v361_v7  ;;  %v168_v31 = vld [vmem:[#allocation8 + $0x58] sm:$0xff]  ;;  %v388_v35 = vpack.c.bf16 %v170_v34, %v169_v33  ;;  %v171_v36 = vld [vmem:[#allocation8 + $0x70] sm:$0xff]  ;;  %p476_p0 = pnand %p475_p13, %p469_p10 }
  0x3f   :  { %363 = vmatprep.subr.bf16.mxu0 %v501_v0  ;;  %374 = vmatpush3.bf16.msra.mxu1 %v373_v15  ;;  %v385_v32 = vpack.c.bf16 %v168_v31, %v167_v30  ;;  %v172_v37 = vld [vmem:[#allocation8 + $0x78] sm:$0xff] }
  0x40   :  { %375 = vmatprep.subr.bf16.mxu1 %v501_v0  ;;  %v391_v38 = vpack.c.bf16 %v172_v37, %v171_v36  ;;  %v274_v39 = vld [vmem:[%s597_s2] ss:$0 sm:$0xff] }
  0x41   :  { %v276_v44 = vld [vmem:[%s599_s4] ss:$0 sm:$0xff] }
  0x42   :  { %365 = vmatpush3.bf16.msra.mxu0 %v364_v16 }
  0x43   :  { %366 = vmatprep.subr.bf16.mxu0 %v501_v0  ;;  %377 = vmatpush3.bf16.msra.mxu1 %v376_v21 }
  0x44   :  { %378 = vmatprep.subr.bf16.mxu1 %v501_v0 }
  0x46   :  { %368 = vmatpush3.bf16.msra.mxu0 %v367_v22 }
  0x47   :  { %380 = vmatpush3.bf16.msra.mxu1 %v379_v25 }
  0x48   :  { %381 = vmatprep.subr.bf16.mxu1 %v501_v0 }
  0x49   :  { %320 = vmatmul.mubr.msk.f32.vlgmr.msra.gmra.mrb[0].mxu0 %vm81_vm1, %v65_v26 }
  0x4b   :  { %383 = vmatpush3.bf16.msra.mxu1 %v382_v29 }
  0x4c   :  { %384 = vmatprep.subr.bf16.mxu1 %v501_v0 }
  0x4f   :  { %386 = vmatpush3.bf16.msra.mxu1 %v385_v32 }
  0x50   :  { %387 = vmatprep.subr.bf16.mxu1 %v501_v0 }
  0x53   :  { %389 = vmatpush3.bf16.msra.mxu1 %v388_v35 }
  0x54   :  { %390 = vmatprep.subr.bf16.mxu1 %v501_v0 }
  0x57   :  { %392 = vmatpush3.bf16.msra.mxu1 %v391_v38 }
 0x11c   :  { %v151_v40 = vpop.f32.mrb[0].mxu0 }
 0x11d   :  { %v152_v41 = vadd.f32 %v274_v39, %v151_v40  ;;  %v321_v42 = vpop.f32.mrb[1].mxu0 }
 0x11f   :  { %v155_v43 = vmax.f32 %v152_v41, 0.0 }
 0x121   :  { %355 = vmatmul.mubr.f32.vlgmr.msra.gmra.mrb[0].mxu1 %v155_v43 }
 0x1f4   :  { %v239_v45 = vpop.f32.mrb[0].mxu1 }
 0x1f5   :  { %v256_v46 = vadd.f32 %v276_v44, %v239_v45  ;;  %v356_v47 = vpop.f32.mrb[1].mxu1 }
 0x1f7   :  { %257 = vst [vmem:[#allocation9] sm:$0xff] %v256_v46 }
 0x1f8   :  { %479 = shalt.err (!%p476_p0)
}
 0x1f9   :  { %s480_s11 = scalar_lea.hbm %s600_s5, 128 }
 0x1fa   :  { %p481_p1 = scmp.ne.s32.totalorder %s600_s5, %s480_s11  ;;  %p484_p2 = scmp.lt.u32.totalorder %s480_s11, %s600_s5 }
 0x1fc   :  { %p486_p3 = pnand %p484_p2, %p481_p1 }
 0x1fe   :  { %489 = shalt.err (!%p486_p3)
}
 0x1ff   :  { %267 = dma.vmem_to_hbm [thread:$0]  %s265_s8, 128, %s600_s5, [#allocation5]  }
 0x200   :  { %494 = dma.done.wait [#allocation5], 128  }
 0x201   :  { %495 = vsyncadd [#allocation5], 4294967168 }
 0x202   :  { %271 = vsyncpa [#allocation4], 1 }
 0x203   :  { %272 = vsyncpa [#allocation7], 1 }
 0x204   :  { %273 = vsyncpa [#allocation5], 1 }

// kernel: tpu_custom_call.1
= control target key start
LH: loop header
LB: loop body
LE: loop exit
PB: predicated region body
PF: predicated region fallthrough
CT: control target
= control target key end

     0   :  { %10 = vsyncpa [#allocation4], 0  ;;  %s595_s0 = inlined_call_operand.hbm [shape: f32[8,64], index: 0, kind: input, shape index: {}]   ;;  %s596_s1 = inlined_call_operand.hbm [shape: f32[64,128], index: 1, kind: input, shape index: {}]   ;;  %s597_s2 = inlined_call_operand.vmem [shape: f32[1,128], index: 2, kind: input, shape index: {}]   ;;  %s598_s3 = inlined_call_operand.hbm [shape: f32[128,128], index: 3, kind: input, shape index: {}]   ;;  %s599_s4 = inlined_call_operand.vmem [shape: f32[1,128], index: 4, kind: input, shape index: {}]   ;;  %s600_s5 = inlined_call_operand.hbm [shape: f32[8,128], index: 5, kind: output, shape index: {}]  }
   0x1   :  { %11 = vsyncpa [#allocation7], 0 }
   0x2   :  { %12 = vsyncpa [#allocation5], 0  ;;  %s496_s18 = smov [#allocation6]   ;;  %s402_s22 = scalar_lea.hbm %s596_s1, 1024 }
   0x3   :  { %s28_s19 = sshll.u32 %s496_s18, 4  ;;  %p403_p0 = scmp.ne.s32.totalorder %s596_s1, %s402_s22  ;;  %s29_s19 = int_to_ptr.vmem [resolvable:$true] %s28_s19 }
   0x4   :  { %p406_p1 = scmp.lt.u32.totalorder %s402_s22, %s596_s1 }
   0x6   :  { %p408_p2 = pnand %p406_p1, %p403_p0 }
   0x8   :  { %411 = shalt.err (!%p408_p2)
}
   0x9   :  { %s412_s27 = scalar_lea.vmem %s29_s19, 1024  ;;  %p417_p4 = scmp.lt.s32.totalorder %s29_s19, %s29_s19 }
   0xa   :  { %p413_p3 = scmp.ne.s32.totalorder %s29_s19, %s412_s27  ;;  %p418_p5 = scmp.lt.s32.totalorder %s412_s27, %s412_s27 }
   0xc   :  { %p419_p6 = por %p418_p5, %p417_p4 }
   0xe   :  { %p420_p7 = pnand %p419_p6, %p413_p3 }
  0x10   :  { %423 = shalt.err (!%p420_p7)
}
  0x11   :  { %s497_s28 = smov 128   ;;  %s498_s29 = smov 8  }
  0x12   :  { %34 = dma.hbm_to_vmem [thread:$0]  %s596_s1, 1024, %s29_s19, [#allocation7], %s497_s28, %s497_s28, %s498_s29  }
  0x13   :  { %s499_s7 = smov [#allocation3]   ;;  %s500_s9 = smov [#allocation8]  }
  0x14   :  { %s19_s8 = sshll.u32 %s499_s7, 4  ;;  %s42_s10 = sshll.u32 %s500_s9, 4  ;;  %s20_s8 = int_to_ptr.vmem [resolvable:$true] %s19_s8  ;;  %s43_s10 = int_to_ptr.vmem [resolvable:$true] %s42_s10 }
  0x15   :  { %s424_s13 = scalar_lea.hbm %s595_s0, 128 }
  0x16   :  { %p425_p8 = scmp.ne.s32.totalorder %s595_s0, %s424_s13  ;;  %p428_p9 = scmp.lt.u32.totalorder %s424_s13, %s595_s0 }
  0x18   :  { %p430_p10 = pnand %p428_p9, %p425_p8 }
  0x1a   :  { %433 = shalt.err (!%p430_p10)
}
  0x1b   :  { %s434_s1 = scalar_lea.vmem %s20_s8, 128  ;;  %p439_p12 = scmp.lt.s32.totalorder %s20_s8, %s20_s8 }
  0x1c   :  { %p435_p11 = scmp.ne.s32.totalorder %s20_s8, %s434_s1  ;;  %p440_p13 = scmp.lt.s32.totalorder %s434_s1, %s434_s1 }
  0x1e   :  { %p441_p0 = por %p440_p13, %p439_p12 }
  0x20   :  { %p442_p1 = pnand %p441_p0, %p435_p11 }
  0x22   :  { %445 = shalt.err (!%p442_p1)
}
  0x23   :  { %22 = dma.hbm_to_vmem [thread:$0]  %s595_s0, 128, %s20_s8, [#allocation4]  }
  0x24   :  { %s446_s22 = scalar_lea.hbm %s598_s3, 2048 }
  0x25   :  { %p447_p2 = scmp.ne.s32.totalorder %s598_s3, %s446_s22  ;;  %p450_p3 = scmp.lt.u32.totalorder %s446_s22, %s598_s3 }
  0x27   :  { %p452_p4 = pnand %p450_p3, %p447_p2 }
  0x29   :  { %455 = shalt.err (!%p452_p4)
}
  0x2a   :  { %s456_s27 = scalar_lea.vmem %s43_s10, 2048  ;;  %p461_p6 = scmp.lt.s32.totalorder %s43_s10, %s43_s10 }
  0x2b   :  { %p457_p5 = scmp.ne.s32.totalorder %s43_s10, %s456_s27  ;;  %p462_p7 = scmp.lt.s32.totalorder %s456_s27, %s456_s27 }
  0x2d   :  { %p463_p8 = por %p462_p7, %p461_p6 }
  0x2f   :  { %p464_p9 = pnand %p463_p8, %p457_p5 }
  0x31   :  { %467 = shalt.err (!%p464_p9)
}
  0x32   :  { %48 = dma.hbm_to_vmem [thread:$0]  %s598_s3, 2048, %s43_s10, [#allocation7], %s497_s28, %s497_s28, %s498_s29  }
  0x33   :  { %490 = dma.done.wait [#allocation4], 128  }
  0x34   :  { %491 = vsyncadd [#allocation4], 4294967168 }
  0x35   :  { %492 = dma.done.wait [#allocation7], 3072  }
  0x36   :  { %493 = vsyncadd [#allocation7], 4294964224  ;;  %v501_v0 = vmov 0.0|0.0   ;;  %vm502_vm0 = vmmov 0   ;;  %v503_v1 = vmov 0.0   ;;  %v66_v2 = vld [vmem:[#allocation6] sm:$0xff] }
  0x37   :  { %357 = vmatprep.subr.bf16.mxu0 %v501_v0  ;;  %319 = vmatprep.mubr.msk.f32.mxu0 %vm502_vm0, %v503_v1  ;;  %v67_v3 = vld [vmem:[#allocation6 + $0x8] sm:$0xff]  ;;  %v68_v4 = vld [vmem:[#allocation6 + $0x10] sm:$0xff]  ;;  %v69_v6 = vld [vmem:[#allocation6 + $0x18] sm:$0xff]  ;;  %vm81_vm1 = vcmask 523264   ;;  %s504_s7 = smov [#allocation9]  }
  0x38   :  { %369 = vmatprep.subr.bf16.mxu1 %v501_v0  ;;  %354 = vmatprep.mubr.msk.f32.mxu1 %vm502_vm0, %v503_v1  ;;  %v358_v5 = vpack.c.bf16 %v67_v3, %v66_v2  ;;  %v361_v7 = vpack.c.bf16 %v69_v6, %v68_v4  ;;  %v157_v8 = vld [vmem:[#allocation8] sm:$0xff]  ;;  %v158_v9 = vld [vmem:[#allocation8 + $0x8] sm:$0xff]  ;;  %v159_v10 = vld [vmem:[#allocation8 + $0x10] sm:$0xff]  ;;  %s264_s8 = sshll.u32 %s504_s7, 4  ;;  %s265_s8 = int_to_ptr.vmem [resolvable:$true] %s264_s8 }
  0x39   :  { %v70_v11 = vld [vmem:[#allocation6 + $0x20] sm:$0xff]  ;;  %v71_v12 = vld [vmem:[#allocation6 + $0x28] sm:$0xff]  ;;  %v370_v13 = vpack.c.bf16 %v158_v9, %v157_v8  ;;  %v160_v14 = vld [vmem:[#allocation8 + $0x18] sm:$0xff]  ;;  %s468_s9 = scalar_lea.vmem %s265_s8, 128  ;;  %p473_p11 = scmp.lt.s32.totalorder %s265_s8, %s265_s8 }
  0x3a   :  { %359 = vmatpush3.bf16.msra.mxu0 %v358_v5  ;;  %v373_v15 = vpack.c.bf16 %v160_v14, %v159_v10  ;;  %v364_v16 = vpack.c.bf16 %v71_v12, %v70_v11  ;;  %v161_v17 = vld [vmem:[#allocation8 + $0x20] sm:$0xff]  ;;  %v162_v18 = vld [vmem:[#allocation8 + $0x28] sm:$0xff]  ;;  %v72_v19 = vld [vmem:[#allocation6 + $0x30] sm:$0xff]  ;;  %p469_p10 = scmp.ne.s32.totalorder %s265_s8, %s468_s9  ;;  %p474_p12 = scmp.lt.s32.totalorder %s468_s9, %s468_s9 }
  0x3b   :  { %360 = vmatprep.subr.bf16.mxu0 %v501_v0  ;;  %371 = vmatpush3.bf16.msra.mxu1 %v370_v13  ;;  %v73_v20 = vld [vmem:[#allocation6 + $0x38] sm:$0xff]  ;;  %v376_v21 = vpack.c.bf16 %v162_v18, %v161_v17  ;;  %v163_v23 = vld [vmem:[#allocation8 + $0x30] sm:$0xff]  ;;  %v165_v27 = vld [vmem:[#allocation8 + $0x40] sm:$0xff] }
  0x3c   :  { %372 = vmatprep.subr.bf16.mxu1 %v501_v0  ;;  %v367_v22 = vpack.c.bf16 %v73_v20, %v72_v19  ;;  %v164_v24 = vld [vmem:[#allocation8 + $0x38] sm:$0xff]  ;;  %v166_v28 = vld [vmem:[#allocation8 + $0x48] sm:$0xff]  ;;  %v167_v30 = vld [vmem:[#allocation8 + $0x50] sm:$0xff]  ;;  %p475_p13 = por %p474_p12, %p473_p11 }
  0x3d   :  { %v379_v25 = vpack.c.bf16 %v164_v24, %v163_v23  ;;  %v65_v26 = vld [vmem:[#allocation3] sm:$0xff]  ;;  %v382_v29 = vpack.c.bf16 %v166_v28, %v165_v27  ;;  %v169_v33 = vld [vmem:[#allocation8 + $0x60] sm:$0xff]  ;;  %v170_v34 = vld [vmem:[#allocation8 + $0x68] sm:$0xff] }
  0x3e   :  { %362 = vmatpush3.bf16.msra.mxu0 %v361_v7  ;;  %v168_v31 = vld [vmem:[#allocation8 + $0x58] sm:$0xff]  ;;  %v388_v35 = vpack.c.bf16 %v170_v34, %v169_v33  ;;  %v171_v36 = vld [vmem:[#allocation8 + $0x70] sm:$0xff]  ;;  %p476_p0 = pnand %p475_p13, %p469_p10 }
  0x3f   :  { %363 = vmatprep.subr.bf16.mxu0 %v501_v0  ;;  %374 = vmatpush3.bf16.msra.mxu1 %v373_v15  ;;  %v385_v32 = vpack.c.bf16 %v168_v31, %v167_v30  ;;  %v172_v37 = vld [vmem:[#allocation8 + $0x78] sm:$0xff] }
  0x40   :  { %375 = vmatprep.subr.bf16.mxu1 %v501_v0  ;;  %v391_v38 = vpack.c.bf16 %v172_v37, %v171_v36  ;;  %v274_v39 = vld [vmem:[%s597_s2] ss:$0 sm:$0xff] }
  0x41   :  { %v276_v44 = vld [vmem:[%s599_s4] ss:$0 sm:$0xff] }
  0x42   :  { %365 = vmatpush3.bf16.msra.mxu0 %v364_v16 }
  0x43   :  { %366 = vmatprep.subr.bf16.mxu0 %v501_v0  ;;  %377 = vmatpush3.bf16.msra.mxu1 %v376_v21 }
  0x44   :  { %378 = vmatprep.subr.bf16.mxu1 %v501_v0 }
  0x46   :  { %368 = vmatpush3.bf16.msra.mxu0 %v367_v22 }
  0x47   :  { %380 = vmatpush3.bf16.msra.mxu1 %v379_v25 }
  0x48   :  { %381 = vmatprep.subr.bf16.mxu1 %v501_v0 }
  0x49   :  { %320 = vmatmul.mubr.msk.f32.vlgmr.msra.gmra.mrb[0].mxu0 %vm81_vm1, %v65_v26 }
  0x4b   :  { %383 = vmatpush3.bf16.msra.mxu1 %v382_v29 }
  0x4c   :  { %384 = vmatprep.subr.bf16.mxu1 %v501_v0 }
  0x4f   :  { %386 = vmatpush3.bf16.msra.mxu1 %v385_v32 }
  0x50   :  { %387 = vmatprep.subr.bf16.mxu1 %v501_v0 }
  0x53   :  { %389 = vmatpush3.bf16.msra.mxu1 %v388_v35 }
  0x54   :  { %390 = vmatprep.subr.bf16.mxu1 %v501_v0 }
  0x57   :  { %392 = vmatpush3.bf16.msra.mxu1 %v391_v38 }
 0x11c   :  { %v151_v40 = vpop.f32.mrb[0].mxu0 }
 0x11d   :  { %v152_v41 = vadd.f32 %v274_v39, %v151_v40  ;;  %v321_v42 = vpop.f32.mrb[1].mxu0 }
 0x11f   :  { %v155_v43 = vmax.f32 %v152_v41, 0.0 }
 0x121   :  { %355 = vmatmul.mubr.f32.vlgmr.msra.gmra.mrb[0].mxu1 %v155_v43 }
 0x1f4   :  { %v239_v45 = vpop.f32.mrb[0].mxu1 }
 0x1f5   :  { %v256_v46 = vadd.f32 %v276_v44, %v239_v45  ;;  %v356_v47 = vpop.f32.mrb[1].mxu1 }
 0x1f7   :  { %257 = vst [vmem:[#allocation9] sm:$0xff] %v256_v46 }
 0x1f8   :  { %479 = shalt.err (!%p476_p0)
}
 0x1f9   :  { %s480_s11 = scalar_lea.hbm %s600_s5, 128 }
 0x1fa   :  { %p481_p1 = scmp.ne.s32.totalorder %s600_s5, %s480_s11  ;;  %p484_p2 = scmp.lt.u32.totalorder %s480_s11, %s600_s5 }
 0x1fc   :  { %p486_p3 = pnand %p484_p2, %p481_p1 }
 0x1fe   :  { %489 = shalt.err (!%p486_p3)
}
 0x1ff   :  { %267 = dma.vmem_to_hbm [thread:$0]  %s265_s8, 128, %s600_s5, [#allocation5]  }
 0x200   :  { %494 = dma.done.wait [#allocation5], 128  }
 0x201   :  { %495 = vsyncadd [#allocation5], 4294967168 }
 0x202   :  { %271 = vsyncpa [#allocation4], 1 }
 0x203   :  { %272 = vsyncpa [#allocation7], 1 }
 0x204   :  { %273 = vsyncpa [#allocation5], 1 }

</bundles_post_ra>
